<compile_context>
chip_gen: v5e
topology: v5e:2x2
jax: 0.10.0
libtpu: 0.0.40
codegen_flags: <defaults>
</compile_context>

<pallas_src>
import functools
import math

import jax
import jax.numpy as jnp
from jax.experimental import pallas as pl
from jax.experimental.pallas import tpu as pltpu


def _ctx_scatter_kernel(emb_hbm_ref, ctx_slab_ref, out_hbm_ref, copy_sem, *,
                        tc, n_ctx, num_blocks, rem):
    """Writes the learnable ctx rows [1, 1+n_ctx) of `tc` classes per grid step.

    emb_hbm_ref:  (n_cls, seq_len, D) HBM; aliased to out_hbm_ref and never read.
    ctx_slab_ref: (tc, n_ctx, D) VMEM; ctx broadcast over tc classes (constant
                  block index -> fetched once per TensorCore, reused every step).
    out_hbm_ref:  (n_cls, seq_len, D) HBM output (the prompts).
    copy_sem:     DMA completion semaphore.
    """
    del emb_hbm_ref  # prefix / suffix rows are already correct in the aliased buffer
    step = pl.program_id(0)
    cls0 = step * tc

    def scatter(n_classes):
        src = ctx_slab_ref
        if n_classes != tc:                              # static (trace-time) branch
            src = ctx_slab_ref.at[pl.ds(0, n_classes)]
        cp = pltpu.make_async_copy(
            src,
            out_hbm_ref.at[pl.ds(cls0, n_classes), pl.ds(1, n_ctx), :],
            copy_sem)
        cp.start()
        cp.wait()

    if rem == 0:
        # Every block is full-sized: one identical strided DMA per step.
        scatter(tc)
    else:
        @pl.when(step < num_blocks - 1)
        def _full_block():
            scatter(tc)

        @pl.when(step == num_blocks - 1)
        def _tail_block():
            scatter(rem)        # static remainder -> smaller, in-bounds DMA


def _pick_block_classes(n_cls, bytes_per_class, vmem_budget_bytes):
    # Per-grid-step cost (bookkeeping + DMA issue/wait) is worth roughly
    # STEP_OVERHEAD_BYTES of HBM traffic; the broadcast slab costs ~3x its size
    # in HBM traffic (one XLA write + up to two per-core fetches).  Balance:
    #   minimize 3*tc*bpc + (n_cls/tc)*STEP  =>  tc* = sqrt(n_cls*STEP/(3*bpc))
    STEP_OVERHEAD_BYTES = 512 * 1024
    tc_balanced = int(math.sqrt(max(1.0, n_cls * STEP_OVERHEAD_BYTES /
                                    (3.0 * bytes_per_class))))
    # Slab is double-buffered by the pipeline; keep 2x slab within the budget
    # (default 16 MiB -> fits v7x's 32 MiB scoped VMEM with headroom).
    tc_vmem = max(1, vmem_budget_bytes // (2 * bytes_per_class))
    return max(1, min(tc_balanced, tc_vmem))


@functools.partial(
    jax.jit,
    static_argnames=("n_ctx", "block_classes", "vmem_block_budget_bytes"),
    donate_argnames=("embedding",))
def prompt_learner_forward(embedding, ctx, *, n_ctx, block_classes=None,
                           vmem_block_budget_bytes=16 * 1024 * 1024):
    """CoOp PromptLearner.forward() with class_token_position='end'.

    embedding: (n_cls, seq_len, ctx_dim) frozen token_embedding(tokenized_prompts)
               (token_prefix == embedding[:, :1], token_suffix == embedding[:, 1+n_ctx:]).
               The buffer is donated and aliased into the output; only the n_ctx
               learnable rows of each class are (re)written.
    ctx:       (n_ctx, ctx_dim) learnable context (generic, CSC=False).
    returns:   (n_cls, seq_len, ctx_dim) prompts.
    """
    n_cls, seq_len, ctx_dim = embedding.shape
    assert ctx.shape == (n_ctx, ctx_dim)
    assert 1 + n_ctx <= seq_len
    # CoOp concatenates ctx with the frozen (often fp16/bf16) embeddings; cast once.
    ctx = ctx.astype(embedding.dtype)

    itemsize = jnp.dtype(embedding.dtype).itemsize
    bytes_per_class = n_ctx * ctx_dim * itemsize

    if block_classes is None:
        block_classes = _pick_block_classes(n_cls, bytes_per_class,
                                            vmem_block_budget_bytes)
    tc = int(min(block_classes, n_cls))
    # v7x megacore: keep >= 2 grid blocks so dimension_semantics=("parallel",)
    # can hand work to both TensorCores (no-op on single-core v5e / v6e).
    if n_cls >= 2:
        tc = min(tc, pl.cdiv(n_cls, 2))
    # Prefer a block size dividing n_cls so every step issues an identical
    # full-sized DMA; otherwise the last step uses a smaller static-shape DMA.
    for cand in range(tc, max(tc // 2, 1), -1):
        if n_cls % cand == 0:
            tc = cand
            break
    num_blocks = pl.cdiv(n_cls, tc)
    rem = n_cls % tc

    # Broadcast-ctx slab, the DMA source: written once by XLA, DMA'd into VMEM
    # once per TensorCore (constant index_map => no per-step refetch), never
    # re-broadcast inside the kernel.
    ctx_slab = jnp.broadcast_to(ctx[None, :, :], (tc, n_ctx, ctx_dim))

    kernel = functools.partial(_ctx_scatter_kernel, tc=tc, n_ctx=n_ctx,
                               num_blocks=num_blocks, rem=rem)

    grid_spec = pltpu.PrefetchScalarGridSpec(
        num_scalar_prefetch=0,
        grid=(num_blocks,),
        in_specs=[
            pl.BlockSpec(memory_space=pl.ANY),                         # embedding (aliased; unread)
            pl.BlockSpec((tc, n_ctx, ctx_dim), lambda i: (0, 0, 0)),   # ctx slab -> VMEM resident
        ],
        out_specs=pl.BlockSpec(memory_space=pl.ANY),                   # prompts (manual DMA writes)
        scratch_shapes=[pltpu.SemaphoreType.DMA],
    )

    cost = pl.CostEstimate(
        flops=0, transcendentals=0,
        bytes_accessed=(n_cls + 3 * tc) * bytes_per_class)

    return pl.pallas_call(
        kernel,
        out_shape=jax.ShapeDtypeStruct((n_cls, seq_len, ctx_dim), embedding.dtype),
        grid_spec=grid_spec,
        input_output_aliases={0: 0},   # embedding buffer reused as the prompts output
        compiler_params=pltpu.CompilerParams(
            dimension_semantics=("parallel",),
            vmem_limit_bytes=32 * 1024 * 1024),
        cost_estimate=cost,
    )(embedding, ctx_slab)


if __name__ == "__main__":
    # Small deterministic setup consistent with the module:
    #   n_cls classes, n_ctx learnable context tokens, ctx_dim embedding width,
    #   seq_len total tokenized-prompt length (CLIP uses 77/512; shrunk here).
    def run_case(key, n_cls, n_ctx, ctx_dim, seq_len, block_classes=None):
        dtype = jnp.float32
        k_ctx, k_emb = jax.random.split(key)

        # nn.init.normal_(ctx_vectors, std=0.02)  (generic context, CSC=False)
        ctx = (0.02 * jax.random.normal(k_ctx, (n_ctx, ctx_dim))).astype(dtype)
        # Synthetic frozen token_embedding(tokenized_prompts).
        embedding = jax.random.normal(k_emb, (n_cls, seq_len, ctx_dim)).astype(dtype)

        # Pure-JAX reference of the 'end' concatenation semantics, materialized
        # BEFORE the kernel call because `embedding` is donated.
        token_prefix = embedding[:, :1, :]             # SOS
        token_suffix = embedding[:, 1 + n_ctx:, :]     # classname + EOS + padding
        ref = jnp.concatenate(
            [token_prefix,
             jnp.broadcast_to(ctx[None, :, :], (n_cls, n_ctx, ctx_dim)),
             token_suffix],
            axis=1)
        ref = jax.block_until_ready(ref)

        prompts = prompt_learner_forward(embedding, ctx, n_ctx=n_ctx,
                                         block_classes=block_classes)
        prompts = jax.block_until_ready(prompts)

        assert prompts.shape == (n_cls, seq_len, ctx_dim)
        assert prompts.dtype == dtype
        assert jnp.allclose(prompts, ref), "Pallas output mismatch vs reference"

    key = jax.random.PRNGKey(0)
    k0, k1 = jax.random.split(key)

    # Case 1: auto block size -> 2 full blocks of 8 classes (even split; both
    # v7x TensorCores get work; every DMA full-sized).
    run_case(k0, n_cls=16, n_ctx=4, ctx_dim=128, seq_len=16)

    # Case 2: ragged tail -- 10 classes with blocks of 4 -> [4, 4, 2]; the last
    # grid step exercises the static-remainder (smaller, in-bounds) DMA path.
    run_case(k1, n_cls=10, n_ctx=4, ctx_dim=128, seq_len=16, block_classes=4)

    print("KERNEL_OK")
</pallas_src>

<mosaic_0001>
module attributes {stable_mosaic.version = 11 : i64} {
  func.func @_ctx_scatter_kernel(%arg0: i32, %arg1: memref<16x16x128xf32, #tpu.memory_space<any>>, %arg2: memref<8x4x128xf32, #tpu.memory_space<vmem>>, %arg3: memref<16x16x128xf32, #tpu.memory_space<any>>, %arg4: memref<!tpu.dma_semaphore, #tpu.memory_space<semaphore_mem>>) attributes {dimension_semantics = [#tpu.dimension_semantics<parallel>], iteration_bounds = array<i64: 2>, scalar_prefetch = 0 : i64, scratch_operands = 1 : i64, tpu.core_type = #tpu.core_type<tc>, window_params = [{}, {pipeline_mode = #tpu.pipeline_mode<synchronous>, transform_indices = @transform_1, window_bounds = array<i64: 8, 4, 128>}, {}]} {
    %c8_i32 = arith.constant 8 : i32
    %0 = arith.muli %arg0, %c8_i32 : i32
    %c1_i32 = arith.constant 1 : i32
    %c0_i32 = arith.constant 0 : i32
    %1 = tpu.memref_slice %arg3[%0, %c1_i32, %c0_i32] : memref<16x16x128xf32, #tpu.memory_space<any>> -> memref<8x4x128xf32, #tpu.memory_space<any>>
    tpu.enqueue_dma source(%arg2 : memref<8x4x128xf32, #tpu.memory_space<vmem>>) target(%1 : memref<8x4x128xf32, #tpu.memory_space<any>>) target_semaphore(%arg4 : memref<!tpu.dma_semaphore, #tpu.memory_space<semaphore_mem>>)
    %c1_i32_0 = arith.constant 1 : i32
    %c0_i32_1 = arith.constant 0 : i32
    %2 = tpu.memref_slice %arg3[%0, %c1_i32_0, %c0_i32_1] : memref<16x16x128xf32, #tpu.memory_space<any>> -> memref<8x4x128xf32, #tpu.memory_space<any>>
    tpu.wait_dma2 semaphore(%arg4 : memref<!tpu.dma_semaphore, #tpu.memory_space<semaphore_mem>>) src(%arg2 : memref<8x4x128xf32, #tpu.memory_space<vmem>>) dst(%2 : memref<8x4x128xf32, #tpu.memory_space<any>>)
    return
  }
  func.func @transform_1(%arg0: i32) -> (i32, i32, i32) {
    %c0_i32 = arith.constant 0 : i32
    %c0_i32_0 = arith.constant 0 : i32
    %c0_i32_1 = arith.constant 0 : i32
    %c0_i32_2 = arith.constant 0 : i32
    return %c0_i32, %c0_i32_0, %c0_i32_1 : i32, i32, i32
  }
}

</mosaic_0001>

<bundles_post_ra>
// kernel: prompt_learner_forward.1
= control target key start
LH: loop header
LB: loop body
LE: loop exit
PB: predicated region body
PF: predicated region fallthrough
CT: control target
= control target key end

     0   :  { %s158_s9 = smov 0   ;;  %s188_s0 = inlined_call_operand.hbm [shape: f32[16,16,128], index: 0, kind: input, shape index: {}, may-alias: {0,2}]   ;;  %s189_s1 = inlined_call_operand.vmem [shape: f32[8,4,128], index: 1, kind: input, shape index: {}]   ;;  %s190_s2 = inlined_call_operand.hbm [shape: f32[16,16,128], index: 2, kind: output, shape index: {}, may-alias: {0,2}]  }
   0x1 LB: > { %s52_s0 = sshll.u32 %s189_s1, 4  ;;  %s78_s12 = sadd.s32 4294967295, %s138_s9   ;;  %s138_s9 = sphi %s158_s9, %s12_s9   ;;  %s53_s0 = int_to_ptr.vmem [resolvable:$true] %s52_s0 }
   0x2   : > { %p88_p0 = scmp.ge.s32.totalorder %s138_s9, 1  ;;  %s83_s13 = sshll.u32 %s78_s12, 7 }
   0x3   : > { %s71_s16 = scalar_lea.hbm %s190_s2, %s83_s13  ;;  %s120_s23 = scalar_lea.hbm %s190_s2, 256 }
   0x4   : > { %s72_s17 = scalar_lea.hbm %s71_s16, 1 }
   0x5   : > { %s54_s18 = sshll.u32 %s72_s17, 4  ;;  %s55_s18 = int_to_ptr.hbm [resolvable:$true] %s54_s18 }
   0x6   : > { %s114_s19 = sshra.s32 %s55_s18, 4  ;;  %s115_s19 = int_to_ptr.hbm [resolvable:$true] %s114_s19 }
   0x7   : > { %s116_s20 = scalar_lea.hbm %s115_s19, 32  ;;  %p121_p4 = scmp.lt.s32.totalorder %s115_s19, %s190_s2 }
   0x8   : > { %p117_p1 = scmp.ne.s32.totalorder %s115_s19, %s116_s20  ;;  %p122_p5 = scmp.lt.s32.totalorder %s120_s23, %s116_s20 }
   0xa   : > { %p118_p2 = pnand %p117_p1, %p88_p0  ;;  %p123_p6 = por %p122_p5, %p121_p4 }
   0xc   : > { %p119_p3 = pneg %p118_p2 }
   0xe   : > { %p124_p7 = pnand %p123_p6, %p119_p3 }
  0x10   : > { %127 = shalt.err (!%p124_p7)  }
  0x11   : > { %s140_s26 = smov 64   ;;  %s141_s27 = smov 256  }
  0x12   : > { %s142_s28 = smov 4  }
  0x13   : > { %86 = dma.vmem_to_hbm [thread:$0]  (%p88_p0), %s53_s0, 512, %s55_s18, [#allocation2], %s140_s26, %s141_s27, %s142_s28 }
  0x14   : > { %133 = dma.done.wait (%p88_p0), [#allocation2], 512 }
  0x15   : > { %135 = vsyncadd (%p88_p0), [#allocation2], 4294966784  ;;  %s12_s9 = sadd.s32 1, %s138_s9  }
  0x16   : > { %p9_p8 = scmp.ge.s32.totalorder %s12_s9, 3  }
  0x18   :  { %11 = sbr.rel (!%p9_p8) target bundleno = 1 (0x1), region = 36 }
  0x1d   :  { %64 = vsyncmov [#allocation2] }
  0x20   :  { %s65_s29 = vpop.sfrf %64 }
  0x21   :  { %p84_p9 = scmp.ne.s32.totalorder %s65_s29, 0 }
  0x23   :  { %69 = shalt.err (%p84_p9)  }

</bundles_post_ra>
